<compile_context>
chip_gen: v6e
topology: v6e:2x2x1
jax: 0.10.0
libtpu: 0.0.40
codegen_flags: <defaults>
</compile_context>

<pallas_src>
import math
from functools import partial

import jax
import jax.numpy as jnp
from jax.experimental import pallas as pl
from jax.experimental.pallas import tpu as pltpu


# ---------------------------------------------------------------------------
# helpers
# ---------------------------------------------------------------------------
def _largest_divisor(n, cap):
    for t in range(min(n, cap), 0, -1):
        if n % t == 0:
            return t
    return 1


def _pick_q_tile(s):
    if s <= 512:
        return s
    for t in (512, 256, 128):
        if s % t == 0:
            return t
    return s


# ---------------------------------------------------------------------------
# Kernel 1: fused Q/K/V projections (three GEMMs per row tile, weights resident)
# ---------------------------------------------------------------------------
def _qkv_proj_kernel(xq_ref, xk_ref, xv_ref, w_ref, b_ref,
                     oq_ref, ok_ref, ov_ref):
    # x*: [tn, D_in] f32; w: [3, D_in, D_out] bf16 (pre-transposed, q pre-scaled);
    # b: [3, 1, D_out] f32; outputs bf16.
    pairs = ((xq_ref, oq_ref), (xk_ref, ok_ref), (xv_ref, ov_ref))
    for i, (x_ref, o_ref) in enumerate(pairs):
        x = x_ref[...].astype(jnp.bfloat16)          # bf16 MXU operands
        y = jax.lax.dot_general(
            x, w_ref[i],
            (((1,), (0,)), ((), ())),                # plain x @ W (no .T relayout)
            preferred_element_type=jnp.float32) + b_ref[i]
        o_ref[...] = y.astype(o_ref.dtype)


def pallas_qkv_projection(q2d, k2d, v2d, w_stack, b_stack, *, max_tile=512):
    """q2d/k2d/v2d: [N, D_in] f32; w_stack: [3, D_in, D_out] bf16;
    b_stack: [3, 1, D_out] f32  ->  three [N, D_out] bf16 arrays."""
    n, d_in = q2d.shape
    d_out = w_stack.shape[2]
    # 512-row tiles keep the fused call within v5e's 16 MiB scoped VMEM even at
    # D=512 bf16; on v6e (128 MiB) max_tile=1024 gets slightly closer to roofline.
    tn = n if n <= max_tile else max_tile

    x_spec = pl.BlockSpec((tn, d_in), lambda r: (r, 0))
    o_spec = pl.BlockSpec((tn, d_out), lambda r: (r, 0))
    w_spec = pl.BlockSpec((3, d_in, d_out), lambda r: (0, 0, 0))   # resident
    b_spec = pl.BlockSpec((3, 1, d_out), lambda r: (0, 0, 0))      # resident
    out_sds = jax.ShapeDtypeStruct((n, d_out), jnp.bfloat16)

    return pl.pallas_call(
        _qkv_proj_kernel,
        out_shape=(out_sds, out_sds, out_sds),
        grid=(pl.cdiv(n, tn),),
        in_specs=[x_spec, x_spec, x_spec, w_spec, b_spec],
        out_specs=(o_spec, o_spec, o_spec),
        compiler_params=pltpu.CompilerParams(
            dimension_semantics=("parallel",)),
    )(q2d, k2d, v2d, w_stack, b_stack)


# ---------------------------------------------------------------------------
# Kernel 2: output projection (row-gridded GEMM, weight resident)
# ---------------------------------------------------------------------------
def _out_proj_kernel(x_ref, w_ref, b_ref, o_ref):
    y = jax.lax.dot_general(
        x_ref[...].astype(jnp.bfloat16), w_ref[...],
        (((1,), (0,)), ((), ())),                    # plain x @ W
        preferred_element_type=jnp.float32) + b_ref[...]
    o_ref[...] = y.astype(o_ref.dtype)


def pallas_linear(x2d, weight_t, bias_row, *, out_dtype=jnp.float32, max_tile=512):
    """x2d: [N, D_in] bf16; weight_t: [D_in, D_out] bf16; bias_row: [1, D_out] f32."""
    n, d_in = x2d.shape
    d_out = weight_t.shape[1]
    tn = n if n <= max_tile else max_tile

    return pl.pallas_call(
        _out_proj_kernel,
        out_shape=jax.ShapeDtypeStruct((n, d_out), out_dtype),
        grid=(pl.cdiv(n, tn),),
        in_specs=[
            pl.BlockSpec((tn, d_in), lambda r: (r, 0)),
            pl.BlockSpec((d_in, d_out), lambda r: (0, 0)),   # resident
            pl.BlockSpec((1, d_out), lambda r: (0, 0)),      # resident
        ],
        out_specs=pl.BlockSpec((tn, d_out), lambda r: (r, 0)),
        compiler_params=pltpu.CompilerParams(
            dimension_semantics=("parallel",)),
    )(x2d, weight_t, bias_row)


# ---------------------------------------------------------------------------
# Kernel 3: multi-head scaled-dot-product attention
#   grid = (batch blocks, query-row tiles); heads fused inside the kernel
# ---------------------------------------------------------------------------
def _attn_kernel(q_ref, k_ref, v_ref, mask_ref, o_ref, acc_ref,
                 *, num_head, zero_pad):
    # q/o: [Bt, tq, D] bf16; k/v: [Bt, S, D] bf16; mask: [tq, S] int8;
    # acc: [Bt, tq, D] f32 scratch.  1/sqrt(dh) already folded into Wq.
    bt, tq, d = q_ref.shape
    _, s_len, _ = k_ref.shape
    dh = d // num_head

    # Additive mask bias, built from the int8 mask and broadcast ONCE (hoisted
    # out of the head loop).
    bias = jnp.where(mask_ref[...] == 0, jnp.float32(-1e32), jnp.float32(0.0))
    bias = jnp.broadcast_to(bias[None, :, :], (bt, tq, s_len))

    for h in range(num_head):                        # static loop over heads
        lo = h * dh
        qh = q_ref[:, :, lo:lo + dh]                 # [Bt, tq, dh] bf16
        kh = k_ref[:, :, lo:lo + dh]                 # [Bt, S,  dh] bf16
        vh = v_ref[:, :, lo:lo + dh]                 # [Bt, S,  dh] bf16

        # batched over the Bt batch block; bf16 operands, f32 accumulation
        scores = jnp.einsum('bqd,bkd->bqk', qh, kh,
                            preferred_element_type=jnp.float32) + bias

        m = jnp.max(scores, axis=-1, keepdims=True)
        e = jnp.exp(scores - m)
        denom = jnp.sum(e, axis=-1, keepdims=True)
        p = (e * pl.reciprocal(denom, approx=True)).astype(vh.dtype)

        acc_ref[:, :, lo:lo + dh] = jnp.einsum(
            'bqk,bkd->bqd', p, vh, preferred_element_type=jnp.float32)

    if zero_pad:
        # zero the first sequence row (== zeroing row 0 of the prob matrix);
        # only the first query tile holds the global row 0.
        @pl.when(pl.program_id(1) == 0)
        def _():
            acc_ref[:, 0:1, :] = jnp.zeros((bt, 1, d), jnp.float32)

    # single lane-dense store of the full [Bt, tq, D] block
    o_ref[...] = acc_ref[...].astype(o_ref.dtype)


def pallas_attention(q_p, k_p, v_p, mask_i8, zero_pad, num_head, *, batch_cap=8):
    """q_p/k_p/v_p: [B, S, D] bf16; mask_i8: [S, S] int8 -> [B, S, D] bf16."""
    b, s, d = q_p.shape
    bt = _largest_divisor(b, batch_cap)      # pack several batch elems per step
    tq = _pick_q_tile(s)                     # query-row tiling for long S

    kernel = partial(_attn_kernel, num_head=num_head, zero_pad=zero_pad)
    q_spec = pl.BlockSpec((bt, tq, d), lambda bi, qi: (bi, qi, 0))
    kv_spec = pl.BlockSpec((bt, s, d), lambda bi, qi: (bi, 0, 0))
    m_spec = pl.BlockSpec((tq, s), lambda bi, qi: (qi, 0))

    return pl.pallas_call(
        kernel,
        out_shape=jax.ShapeDtypeStruct((b, s, d), q_p.dtype),
        grid=(b // bt, s // tq),
        in_specs=[q_spec, kv_spec, kv_spec, m_spec],
        out_specs=q_spec,
        scratch_shapes=[pltpu.VMEM((bt, tq, d), jnp.float32)],
        compiler_params=pltpu.CompilerParams(
            dimension_semantics=("parallel", "parallel")),
    )(q_p, k_p, v_p, mask_i8)


# ---------------------------------------------------------------------------
# Parameter init (PyTorch layout) + one-time prepare (transpose/stack/scale/cast)
# ---------------------------------------------------------------------------
def xavier_uniform(key, shape):
    fan_out, fan_in = shape
    bound = math.sqrt(6.0 / (fan_in + fan_out))
    return jax.random.uniform(key, shape, jnp.float32, -bound, bound)


def init_params(key, dim_model, key_query_same):
    keys = jax.random.split(key, 4)
    params = {
        "Wk": xavier_uniform(keys[0], (dim_model, dim_model)),
        "bk": jnp.zeros((dim_model,), jnp.float32),
        "Wv": xavier_uniform(keys[1], (dim_model, dim_model)),
        "bv": jnp.zeros((dim_model,), jnp.float32),
        # projection_out keeps PyTorch's default nn.Linear-style init
        "Wo": jax.random.uniform(
            keys[2], (dim_model, dim_model), jnp.float32,
            -1.0 / math.sqrt(dim_model), 1.0 / math.sqrt(dim_model)),
        "bo": jnp.zeros((dim_model,), jnp.float32),
    }
    if not key_query_same:
        params["Wq"] = xavier_uniform(keys[3], (dim_model, dim_model))
        params["bq"] = jnp.zeros((dim_model,), jnp.float32)
    return params


def prepare_params(params, num_head, key_query_same):
    """One-time hoist: pre-transpose to [D_in, D_out], pre-stack QKV weights,
    fold 1/sqrt(dim_head) into the q slot, cast weights to bf16."""
    d = params["Wk"].shape[0]
    scale = 1.0 / math.sqrt(d // num_head)
    wq = params["Wk"] if key_query_same else params["Wq"]
    bq = params["bk"] if key_query_same else params["bq"]
    w_qkv = jnp.stack([wq.T * scale, params["Wk"].T, params["Wv"].T],
                      axis=0).astype(jnp.bfloat16)                 # [3, D, D]
    b_qkv = jnp.stack([bq * scale, params["bk"], params["bv"]],
                      axis=0).reshape(3, 1, d).astype(jnp.float32)  # [3, 1, D]
    return {
        "w_qkv": w_qkv,
        "b_qkv": b_qkv,
        "w_out": params["Wo"].T.astype(jnp.bfloat16),               # [D, D]
        "b_out": params["bo"].reshape(1, d).astype(jnp.float32),    # [1, D]
    }


# ---------------------------------------------------------------------------
# Forward pass
# ---------------------------------------------------------------------------
def multi_head_attention_forward(prepared, q, k, v, mask, zero_pad, num_head):
    b, s, d = q.shape

    q_p, k_p, v_p = pallas_qkv_projection(
        q.reshape(b * s, d), k.reshape(b * s, d), v.reshape(b * s, d),
        prepared["w_qkv"], prepared["b_qkv"])

    mask_i8 = (mask != 0).astype(jnp.int8)   # 1 byte/elem; bias built in-kernel

    attn = pallas_attention(q_p.reshape(b, s, d), k_p.reshape(b, s, d),
                            v_p.reshape(b, s, d), mask_i8, zero_pad, num_head)

    out = pallas_linear(attn.reshape(b * s, d),
                        prepared["w_out"], prepared["b_out"],
                        out_dtype=q.dtype)
    return out.reshape(b, s, d)


# ---------------------------------------------------------------------------
# Pure-JAX f32 reference (mirrors the PyTorch module) for a sanity check
# ---------------------------------------------------------------------------
def reference_forward(params, q, k, v, mask, zero_pad, num_head, key_query_same):
    b, s, d = q.shape
    dh = d // num_head
    wq = params["Wk"] if key_query_same else params["Wq"]
    bq = params["bk"] if key_query_same else params["bq"]
    lin = lambda x, w, bb: x @ w.T + bb
    qp = lin(q, wq, bq).reshape(b, s, num_head, dh).transpose(0, 2, 1, 3)
    kp = lin(k, params["Wk"], params["bk"]).reshape(b, s, num_head, dh).transpose(0, 2, 1, 3)
    vp = lin(v, params["Wv"], params["bv"]).reshape(b, s, num_head, dh).transpose(0, 2, 1, 3)
    scores = jnp.einsum('bhqd,bhkd->bhqk', qp, kp) / math.sqrt(dh)
    scores = jnp.where(mask == 0, jnp.float32(-1e32), scores)
    probs = jax.nn.softmax(scores, axis=-1)
    if zero_pad:
        probs = probs.at[:, :, 0, :].set(0.0)
    o = jnp.einsum('bhqk,bhkd->bhqd', probs, vp).transpose(0, 2, 1, 3).reshape(b, s, d)
    return lin(o, params["Wo"], params["bo"])


if __name__ == "__main__":
    # SimpleKT-style config (small)
    batch_size = 2
    seq_len = 8
    dim_model = 32
    num_head = 4
    key_query_same = True
    zero_pad = True

    root = jax.random.PRNGKey(0)
    kp, kq, kk, kv = jax.random.split(root, 4)

    raw_params = init_params(kp, dim_model, key_query_same)
    prepared = prepare_params(raw_params, num_head, key_query_same)

    q = jax.random.normal(kq, (batch_size, seq_len, dim_model), jnp.float32)
    k = jax.random.normal(kk, (batch_size, seq_len, dim_model), jnp.float32)
    v = jax.random.normal(kv, (batch_size, seq_len, dim_model), jnp.float32)

    # causal (lower-triangular) mask, broadcast over batch & heads
    mask = jnp.tril(jnp.ones((seq_len, seq_len), jnp.float32))

    out = multi_head_attention_forward(
        prepared, q, k, v, mask, zero_pad, num_head)
    out = jax.block_until_ready(out)

    ref = reference_forward(raw_params, q, k, v, mask, zero_pad,
                            num_head, key_query_same)

    assert out.shape == (batch_size, seq_len, dim_model)
    assert bool(jnp.all(jnp.isfinite(out)))
    # zero_pad: attention row 0 is exactly zero, so output row 0 equals the
    # (zero) projection bias for every batch element.
    assert bool(jnp.allclose(out[:, 0, :], 0.0, atol=1e-6))
    # bf16-MXU kernel vs f32 reference (loose tolerance for bf16 accumulation)
    max_err = float(jnp.max(jnp.abs(out - ref)))
    assert max_err < 0.2, f"max abs error vs f32 reference too large: {max_err}"
    print("KERNEL_OK")
</pallas_src>

<mosaic_0001>
module attributes {stable_mosaic.version = 11 : i64} {
  func.func @_qkv_proj_kernel(%arg0: i32, %arg1: memref<16x32xf32, #tpu.memory_space<vmem>>, %arg2: memref<16x32xf32, #tpu.memory_space<vmem>>, %arg3: memref<16x32xf32, #tpu.memory_space<vmem>>, %arg4: memref<3x32x32xbf16, #tpu.memory_space<vmem>>, %arg5: memref<3x1x32xf32, #tpu.memory_space<vmem>>, %arg6: memref<16x32xbf16, #tpu.memory_space<vmem>>, %arg7: memref<16x32xbf16, #tpu.memory_space<vmem>>, %arg8: memref<16x32xbf16, #tpu.memory_space<vmem>>) attributes {dimension_semantics = [#tpu.dimension_semantics<parallel>], iteration_bounds = array<i64: 1>, scalar_prefetch = 0 : i64, scratch_operands = 0 : i64, tpu.core_type = #tpu.core_type<tc>, window_params = [{transform_indices = @transform_0, window_bounds = array<i64: 16, 32>}, {transform_indices = @transform_1, window_bounds = array<i64: 16, 32>}, {transform_indices = @transform_2, window_bounds = array<i64: 16, 32>}, {pipeline_mode = #tpu.pipeline_mode<synchronous>, transform_indices = @transform_3, window_bounds = array<i64: 3, 32, 32>}, {pipeline_mode = #tpu.pipeline_mode<synchronous>, transform_indices = @transform_4, window_bounds = array<i64: 3, 1, 32>}, {transform_indices = @transform_5, window_bounds = array<i64: 16, 32>}, {transform_indices = @transform_6, window_bounds = array<i64: 16, 32>}, {transform_indices = @transform_7, window_bounds = array<i64: 16, 32>}]} {
    %c0 = arith.constant 0 : index
    %c0_0 = arith.constant 0 : index
    %0 = vector.load %arg1[%c0, %c0_0] : memref<16x32xf32, #tpu.memory_space<vmem>>, vector<16x32xf32>
    %1 = arith.truncf %0 : vector<16x32xf32> to vector<16x32xbf16>
    %c0_1 = arith.constant 0 : index
    %c0_2 = arith.constant 0 : index
    %c0_3 = arith.constant 0 : index
    %2 = vector.load %arg4[%c0_1, %c0_2, %c0_3] : memref<3x32x32xbf16, #tpu.memory_space<vmem>>, vector<1x32x32xbf16>
    %3 = vector.shape_cast %2 : vector<1x32x32xbf16> to vector<32x32xbf16>
    %cst = arith.constant dense<0.000000e+00> : vector<16x32xf32>
    %4 = tpu.matmul %1, %3, %cst {dimension_numbers = #tpu.dot_dimension_numbers<[1], [0], [0], [1], [0, 0, 1, 1], [], []>} : vector<16x32xbf16>, vector<32x32xbf16>, vector<16x32xf32> -> vector<16x32xf32>
    %c0_4 = arith.constant 0 : index
    %c0_5 = arith.constant 0 : index
    %c0_6 = arith.constant 0 : index
    %5 = vector.load %arg5[%c0_4, %c0_5, %c0_6] : memref<3x1x32xf32, #tpu.memory_space<vmem>>, vector<1x1x32xf32>
    %6 = vector.shape_cast %5 : vector<1x1x32xf32> to vector<1x32xf32>
    %7 = vector.broadcast %6 : vector<1x32xf32> to vector<16x32xf32>
    %8 = arith.addf %4, %7 : vector<16x32xf32>
    %9 = arith.truncf %8 : vector<16x32xf32> to vector<16x32xbf16>
    %c0_7 = arith.constant 0 : index
    %c0_8 = arith.constant 0 : index
    %10 = vector.load %arg6[%c0_7, %c0_8] : memref<16x32xbf16, #tpu.memory_space<vmem>>, vector<16x32xbf16>
    tpu.vector_store %arg6[%c0_7, %c0_8], %9 {strides = array<i32>} : memref<16x32xbf16, #tpu.memory_space<vmem>>, vector<16x32xbf16>,
    %c0_9 = arith.constant 0 : index
    %c0_10 = arith.constant 0 : index
    %11 = vector.load %arg2[%c0_9, %c0_10] : memref<16x32xf32, #tpu.memory_space<vmem>>, vector<16x32xf32>
    %12 = arith.truncf %11 : vector<16x32xf32> to vector<16x32xbf16>
    %c1 = arith.constant 1 : index
    %c0_11 = arith.constant 0 : index
    %c0_12 = arith.constant 0 : index
    %13 = vector.load %arg4[%c1, %c0_11, %c0_12] : memref<3x32x32xbf16, #tpu.memory_space<vmem>>, vector<1x32x32xbf16>
    %14 = vector.shape_cast %13 : vector<1x32x32xbf16> to vector<32x32xbf16>
    %cst_13 = arith.constant dense<0.000000e+00> : vector<16x32xf32>
    %15 = tpu.matmul %12, %14, %cst_13 {dimension_numbers = #tpu.dot_dimension_numbers<[1], [0], [0], [1], [0, 0, 1, 1], [], []>} : vector<16x32xbf16>, vector<32x32xbf16>, vector<16x32xf32> -> vector<16x32xf32>
    %c1_14 = arith.constant 1 : index
    %c0_15 = arith.constant 0 : index
    %c0_16 = arith.constant 0 : index
    %16 = vector.load %arg5[%c1_14, %c0_15, %c0_16] : memref<3x1x32xf32, #tpu.memory_space<vmem>>, vector<1x1x32xf32>
    %17 = vector.shape_cast %16 : vector<1x1x32xf32> to vector<1x32xf32>
    %18 = vector.broadcast %17 : vector<1x32xf32> to vector<16x32xf32>
    %19 = arith.addf %15, %18 : vector<16x32xf32>
    %20 = arith.truncf %19 : vector<16x32xf32> to vector<16x32xbf16>
    %c0_17 = arith.constant 0 : index
    %c0_18 = arith.constant 0 : index
    %21 = vector.load %arg7[%c0_17, %c0_18] : memref<16x32xbf16, #tpu.memory_space<vmem>>, vector<16x32xbf16>
    tpu.vector_store %arg7[%c0_17, %c0_18], %20 {strides = array<i32>} : memref<16x32xbf16, #tpu.memory_space<vmem>>, vector<16x32xbf16>,
    %c0_19 = arith.constant 0 : index
    %c0_20 = arith.constant 0 : index
    %22 = vector.load %arg3[%c0_19, %c0_20] : memref<16x32xf32, #tpu.memory_space<vmem>>, vector<16x32xf32>
    %23 = arith.truncf %22 : vector<16x32xf32> to vector<16x32xbf16>
    %c2 = arith.constant 2 : index
    %c0_21 = arith.constant 0 : index
    %c0_22 = arith.constant 0 : index
    %24 = vector.load %arg4[%c2, %c0_21, %c0_22] : memref<3x32x32xbf16, #tpu.memory_space<vmem>>, vector<1x32x32xbf16>
    %25 = vector.shape_cast %24 : vector<1x32x32xbf16> to vector<32x32xbf16>
    %cst_23 = arith.constant dense<0.000000e+00> : vector<16x32xf32>
    %26 = tpu.matmul %23, %25, %cst_23 {dimension_numbers = #tpu.dot_dimension_numbers<[1], [0], [0], [1], [0, 0, 1, 1], [], []>} : vector<16x32xbf16>, vector<32x32xbf16>, vector<16x32xf32> -> vector<16x32xf32>
    %c2_24 = arith.constant 2 : index
    %c0_25 = arith.constant 0 : index
    %c0_26 = arith.constant 0 : index
    %27 = vector.load %arg5[%c2_24, %c0_25, %c0_26] : memref<3x1x32xf32, #tpu.memory_space<vmem>>, vector<1x1x32xf32>
    %28 = vector.shape_cast %27 : vector<1x1x32xf32> to vector<1x32xf32>
    %29 = vector.broadcast %28 : vector<1x32xf32> to vector<16x32xf32>
    %30 = arith.addf %26, %29 : vector<16x32xf32>
    %31 = arith.truncf %30 : vector<16x32xf32> to vector<16x32xbf16>
    %c0_27 = arith.constant 0 : index
    %c0_28 = arith.constant 0 : index
    %32 = vector.load %arg8[%c0_27, %c0_28] : memref<16x32xbf16, #tpu.memory_space<vmem>>, vector<16x32xbf16>
    tpu.vector_store %arg8[%c0_27, %c0_28], %31 {strides = array<i32>} : memref<16x32xbf16, #tpu.memory_space<vmem>>, vector<16x32xbf16>,
    return
  }
  func.func @transform_0(%arg0: i32) -> (i32, i32) {
    %c0_i32 = arith.constant 0 : i32
    %c0_i32_0 = arith.constant 0 : i32
    return %arg0, %c0_i32 : i32, i32
  }
  func.func @transform_1(%arg0: i32) -> (i32, i32) {
    %c0_i32 = arith.constant 0 : i32
    %c0_i32_0 = arith.constant 0 : i32
    return %arg0, %c0_i32 : i32, i32
  }
  func.func @transform_2(%arg0: i32) -> (i32, i32) {
    %c0_i32 = arith.constant 0 : i32
    %c0_i32_0 = arith.constant 0 : i32
    return %arg0, %c0_i32 : i32, i32
  }
  func.func @transform_3(%arg0: i32) -> (i32, i32, i32) {
    %c0_i32 = arith.constant 0 : i32
    %c0_i32_0 = arith.constant 0 : i32
    %c0_i32_1 = arith.constant 0 : i32
    %c0_i32_2 = arith.constant 0 : i32
    return %c0_i32, %c0_i32_0, %c0_i32_1 : i32, i32, i32
  }
  func.func @transform_4(%arg0: i32) -> (i32, i32, i32) {
    %c0_i32 = arith.constant 0 : i32
    %c0_i32_0 = arith.constant 0 : i32
    %c0_i32_1 = arith.constant 0 : i32
    %c0_i32_2 = arith.constant 0 : i32
    return %c0_i32, %c0_i32_0, %c0_i32_1 : i32, i32, i32
  }
  func.func @transform_5(%arg0: i32) -> (i32, i32) {
    %c0_i32 = arith.constant 0 : i32
    %c0_i32_0 = arith.constant 0 : i32
    return %arg0, %c0_i32 : i32, i32
  }
  func.func @transform_6(%arg0: i32) -> (i32, i32) {
    %c0_i32 = arith.constant 0 : i32
    %c0_i32_0 = arith.constant 0 : i32
    return %arg0, %c0_i32 : i32, i32
  }
  func.func @transform_7(%arg0: i32) -> (i32, i32) {
    %c0_i32 = arith.constant 0 : i32
    %c0_i32_0 = arith.constant 0 : i32
    return %arg0, %c0_i32 : i32, i32
  }
}

</mosaic_0001>

<bundles_post_ra>
// kernel: tpu_custom_call.1
= control target key start
LH: loop header
LB: loop body
LE: loop exit
PB: predicated region body
PF: predicated region fallthrough
CT: control target
= control target key end

     0   :  { %13 = vsyncpa [#allocation3], 0  ;;  %s709_s0 = inlined_call_operand.hbm [shape: f32[16,32], index: 0, kind: input, shape index: {}]   ;;  %s710_s1 = inlined_call_operand.hbm [shape: f32[16,32], index: 1, kind: input, shape index: {}]   ;;  %s711_s2 = inlined_call_operand.hbm [shape: f32[16,32], index: 2, kind: input, shape index: {}]   ;;  %s712_s3 = inlined_call_operand.hbm [shape: bf16[3,32,32], index: 3, kind: input, shape index: {}]   ;;  %s713_s4 = inlined_call_operand.vmem [shape: f32[3,1,32], index: 4, kind: input, shape index: {}]   ;;  %s714_s5 = inlined_call_operand.hbm [shape: bf16[16,32], index: 5, kind: output, shape index: {0}]   ;;  %s715_s6 = inlined_call_operand.hbm [shape: bf16[16,32], index: 6, kind: output, shape index: {1}]   ;;  %s716_s7 = inlined_call_operand.hbm [shape: bf16[16,32], index: 7, kind: output, shape index: {2}]  }
   0x1   :  { %14 = vsyncpa [#allocation6], 0 }
   0x2   :  { %15 = vsyncpa [#allocation9], 0 }
   0x3   :  { %16 = vsyncpa [#allocation4], 0 }
   0x4   :  { %17 = vsyncpa [#allocation12], 0  ;;  %s605_s24 = smov [#allocation5]   ;;  %s606_s26 = smov [#allocation2]  }
   0x5   :  { %s35_s25 = sshll.u32 %s605_s24, 4  ;;  %s23_s27 = sshll.u32 %s606_s26, 4  ;;  %s36_s25 = int_to_ptr.vmem [resolvable:$true] %s35_s25  ;;  %s24_s27 = int_to_ptr.vmem [resolvable:$true] %s23_s27 }
   0x6   :  { %s463_s28 = scalar_lea.vmem %s36_s25, 256  ;;  %p468_p1 = scmp.lt.s32.totalorder %s36_s25, %s36_s25 }
   0x7   :  { %p464_p0 = scmp.ne.s32.totalorder %s36_s25, %s463_s28  ;;  %p469_p2 = scmp.lt.s32.totalorder %s463_s28, %s463_s28 }
   0x9   :  { %p470_p3 = por %p469_p2, %p468_p1 }
   0xb   :  { %p471_p4 = pnand %p470_p3, %p464_p0 }
   0xd   :  { %474 = shalt.err (!%p471_p4)
}
   0xe   :  { %s607_s29 = smov 128   ;;  %s608_s30 = smov 8  }
   0xf   :  { %41 = dma.hbm_to_vmem [thread:$0]  %s710_s1, 256, %s36_s25, [#allocation6], %s607_s29, %s607_s29, %s608_s30  }
  0x10   :  { %s483_s10 = scalar_lea.vmem %s24_s27, 256  ;;  %p488_p6 = scmp.lt.s32.totalorder %s24_s27, %s24_s27 }
  0x11   :  { %p484_p5 = scmp.ne.s32.totalorder %s24_s27, %s483_s10  ;;  %p489_p7 = scmp.lt.s32.totalorder %s483_s10, %s483_s10 }
  0x13   :  { %p490_p8 = por %p489_p7, %p488_p6 }
  0x15   :  { %p491_p9 = pnand %p490_p8, %p484_p5 }
  0x17   :  { %494 = shalt.err (!%p491_p9)
}
  0x18   :  { %29 = dma.hbm_to_vmem [thread:$0]  %s709_s0, 256, %s24_s27, [#allocation3], %s607_s29, %s607_s29, %s608_s30  }
  0x19   :  { %s609_s13 = smov [#allocation7]   ;;  %s610_s15 = smov [#allocation8]  }
  0x1a   :  { %s47_s14 = sshll.u32 %s609_s13, 4  ;;  %s59_s16 = sshll.u32 %s610_s15, 4  ;;  %s48_s14 = int_to_ptr.vmem [resolvable:$true] %s47_s14  ;;  %s60_s16 = int_to_ptr.vmem [resolvable:$true] %s59_s16 }
  0x1b   :  { %s503_s17 = scalar_lea.vmem %s48_s14, 256  ;;  %p508_p11 = scmp.lt.s32.totalorder %s48_s14, %s48_s14 }
  0x1c   :  { %p504_p10 = scmp.ne.s32.totalorder %s48_s14, %s503_s17  ;;  %p509_p12 = scmp.lt.s32.totalorder %s503_s17, %s503_s17 }
  0x1e   :  { %p510_p13 = por %p509_p12, %p508_p11 }
  0x20   :  { %p511_p0 = pnand %p510_p13, %p504_p10 }
  0x22   :  { %514 = shalt.err (!%p511_p0)
}
  0x23   :  { %53 = dma.hbm_to_vmem [thread:$0]  %s711_s2, 256, %s48_s14, [#allocation6], %s607_s29, %s607_s29, %s608_s30  }
  0x24   :  { %s523_s19 = scalar_lea.vmem %s60_s16, 768  ;;  %p528_p2 = scmp.lt.s32.totalorder %s60_s16, %s60_s16 }
  0x25   :  { %p524_p1 = scmp.ne.s32.totalorder %s60_s16, %s523_s19  ;;  %p529_p3 = scmp.lt.s32.totalorder %s523_s19, %s523_s19 }
  0x27   :  { %p530_p4 = por %p529_p3, %p528_p2 }
  0x29   :  { %p531_p5 = pnand %p530_p4, %p524_p1 }
  0x2b   :  { %534 = shalt.err (!%p531_p5)
}
  0x2c   :  { %s611_s0 = smov 64   ;;  %s612_s20 = smov 4  }
  0x2d   :  { %65 = dma.hbm_to_vmem [thread:$0]  %s712_s3, 768, %s60_s16, [#allocation9], %s611_s0, %s611_s0, %s612_s20  }
  0x2e   :  { %595 = dma.done.wait [#allocation3], 256  }
  0x2f   :  { %596 = vsyncadd [#allocation3], 4294967040 }
  0x30   :  { %597 = dma.done.wait [#allocation6], 512  }
  0x31   :  { %598 = vsyncadd [#allocation6], 4294966784 }
  0x32   :  { %599 = dma.done.wait [#allocation9], 768  }
  0x33   :  { %600 = vsyncadd [#allocation9], 4294966528  ;;  %v613_v0 = vmov 0.0   ;;  %vm614_vm0 = vmmov 0   ;;  %v449_v1 = vld [vmem:[#allocation8 + $0x8] sm:$0xff]   ;;  %v450_v2 = vld [vmem:[#allocation8 + $0x18] sm:$0xff]  }
  0x34   :  { %412 = vmatprep.subr.bf16.mxu0 %v613_v0  ;;  %420 = vmatprep.subr.bf16.mxu1 %v613_v0  ;;  %v451_v3 = vld [vmem:[#allocation8] sm:$0xff]   ;;  %v452_v4 = vld [vmem:[#allocation8 + $0x10] sm:$0xff]   ;;  %v82_v6 = vld [vmem:[#allocation2 + $0x8] sm:$0xff]  ;;  %vm107_vm1 = vcmask 261120   ;;  %vm160_vm2 = vcmask 257024   ;;  %s615_s25 = smov [#allocation10]  }
  0x35   :  { %416 = vmatprep.mubr.msk.bf16.mxu0 %vm614_vm0, %v613_v0  ;;  %424 = vmatprep.mubr.msk.bf16.mxu1 %vm614_vm0, %v613_v0  ;;  %v81_v5 = vld [vmem:[#allocation2] sm:$0xff]  ;;  %v453_v8 = vld [vmem:[#allocation8 + $0x28] sm:$0xff]   ;;  %v163_v9 = vld [vmem:[#allocation5] sm:$0xff]  ;;  %s332_s26 = sshll.u32 %s615_s25, 4  ;;  %s616_s27 = smov [#allocation11]   ;;  %s333_s26 = int_to_ptr.vmem [resolvable:$true] %s332_s26 }
  0x36   :  { %413 = vmatpush3.bf16.msra.mxu0 %v449_v1  ;;  %421 = vmatpush3.bf16.msra.mxu1 %v450_v2  ;;  %v83_v7 = vpack.c.bf16 %v82_v6, %v81_v5  ;;  %v164_v10 = vld [vmem:[#allocation5 + $0x8] sm:$0xff]  ;;  %v454_v12 = vld [vmem:[#allocation8 + $0x20] sm:$0xff]   ;;  %v245_v13 = vld [vmem:[#allocation7] sm:$0xff]  ;;  %s344_s28 = sshll.u32 %s616_s27, 4  ;;  %s535_s8 = scalar_lea.vmem %s333_s26, 128  ;;  %s345_s28 = int_to_ptr.vmem [resolvable:$true] %s344_s28 }
  0x37   :  { %414 = vmatprep.subr.bf16.mxu0 %v613_v0  ;;  %422 = vmatprep.subr.bf16.mxu1 %v613_v0  ;;  %v165_v11 = vpack.c.bf16 %v164_v10, %v163_v9  ;;  %v246_v14 = vld [vmem:[#allocation7 + $0x8] sm:$0xff]  ;;  %v377_v16 = vld [vmem:[%s713_s4] ss:$0 sm:$0xff]  ;;  %v384_v17 = vld [vmem:[%s713_s4 + $0x1] ss:$0 sm:$0xff]  ;;  %p536_p6 = scmp.ne.s32.totalorder %s333_s26, %s535_s8  ;;  %p540_p7 = scmp.lt.s32.totalorder %s333_s26, %s333_s26 }
  0x38   :  { %v247_v15 = vpack.c.bf16 %v246_v14, %v245_v13  ;;  %v391_v31 = vld [vmem:[%s713_s4 + $0x2] ss:$0 sm:$0xff]  ;;  %p541_p8 = scmp.lt.s32.totalorder %s535_s8, %s535_s8 }
  0x3a   :  { %415 = vmatpush3.bf16.msra.mxu0 %v451_v3  ;;  %423 = vmatpush3.bf16.msra.mxu1 %v452_v4  ;;  %p542_p9 = por %p541_p8, %p540_p7 }
  0x3b   :  { %428 = vmatprep.subr.bf16.mxu0 %v613_v0 }
  0x3c   :  { %p543_p10 = pnand %p542_p9, %p536_p6 }
  0x3d   :  { %417 = vmatmul.mubr.msk.bf16.vlgmr.msra.gmra.mxu0 %vm107_vm1, %v83_v7  ;;  %425 = vmatmul.mubr.msk.bf16.vlgmr.msra.gmra.mxu1 %vm107_vm1, %v165_v11 }
  0x3e   :  { %429 = vmatpush3.bf16.msra.mxu0 %v453_v8  ;;  %432 = vmatprep.mubr.msk.bf16.mxu0 %vm614_vm0, %v613_v0 }
  0x3f   :  { %430 = vmatprep.subr.bf16.mxu0 %v613_v0 }
  0x42   :  { %431 = vmatpush3.bf16.msra.mxu0 %v454_v12 }
  0x45   :  { %433 = vmatmul.mubr.msk.bf16.vlgmr.msra.gmra.mxu0 %vm107_vm1, %v247_v15 }
  0xfd   :  { %v145_v18 = vpop.f32.mrf.mxu0  ;;  %v228_v20 = vpop.f32.mrf.mxu1 }
  0xfe   :  { %v146_v19 = vadd.f32 %v377_v16, %v145_v18  ;;  %v229_v22 = vadd.f32 %v384_v17, %v228_v20 }
  0xff   :  { %v418_v21 = vpop.f32.mrf.mxu0  ;;  %v426_v24 = vpop.f32.mrf.mxu1 }
 0x100   :  { %v397_v23 = vpack.c.bf16 %v146_v19, %v146_v19  ;;  %v399_v25 = vpack.c.bf16 %v229_v22, %v229_v22 }
 0x101   :  { %v148_v26 = vpop.f32.mrf.mxu0  ;;  %v231_v28 = vpop.f32.mrf.mxu1 }
 0x102   :  { %v149_v27 = vadd.f32 %v377_v16, %v148_v26  ;;  %161 = vst.msk [vmem:[#allocation10] sm:$0xf] %vm160_vm2, %v397_v23  ;;  %v232_v30 = vadd.f32 %v384_v17, %v231_v28  ;;  %243 = vst.msk [vmem:[#allocation11] sm:$0xf] %vm160_vm2, %v399_v25 }
 0x103   :  { %v419_v29 = vpop.f32.mrf.mxu0  ;;  %v427_v33 = vpop.f32.mrf.mxu1 }
 0x104   :  { %v398_v32 = vpack.c.bf16 %v149_v27, %v149_v27  ;;  %v400_v34 = vpack.c.bf16 %v232_v30, %v232_v30 }
 0x105   :  { %v310_v35 = vpop.f32.mrf.mxu0 }
 0x106   :  { %v311_v36 = vadd.f32 %v391_v31, %v310_v35  ;;  %162 = vst.msk [vmem:[#allocation10 + $0x4] sm:$0xf] %vm160_vm2, %v398_v32  ;;  %244 = vst.msk [vmem:[#allocation11 + $0x4] sm:$0xf] %vm160_vm2, %v400_v34 }
 0x107   :  { %v434_v37 = vpop.f32.mrf.mxu0 }
 0x108   :  { %546 = shalt.err (!%p543_p10)
}
 0x109   :  { %338 = dma.vmem_to_hbm [thread:$0]  %s333_s26, 128, %s714_s5, [#allocation4], %s611_s0, %s611_s0, %s612_s20   ;;  %v401_v38 = vpack.c.bf16 %v311_v36, %v311_v36 }
 0x10a   :  { %s555_s10 = scalar_lea.vmem %s345_s28, 128  ;;  %p560_p12 = scmp.lt.s32.totalorder %s345_s28, %s345_s28 }
 0x10b   :  { %p556_p11 = scmp.ne.s32.totalorder %s345_s28, %s555_s10  ;;  %p561_p13 = scmp.lt.s32.totalorder %s555_s10, %s555_s10 }
 0x10d   :  { %p562_p0 = por %p561_p13, %p560_p12 }
 0x10f   :  { %p563_p1 = pnand %p562_p0, %p556_p11 }
 0x111   :  { %566 = shalt.err (!%p563_p1)
}
 0x112   :  { %350 = dma.vmem_to_hbm [thread:$0]  %s345_s28, 128, %s715_s6, [#allocation12], %s611_s0, %s611_s0, %s612_s20   ;;  %v313_v39 = vpop.f32.mrf.mxu0  ;;  %325 = vst.msk [vmem:[#allocation13] sm:$0xf] %vm160_vm2, %v401_v38 }
 0x113   :  { %s617_s13 = smov [#allocation13]   ;;  %v314_v40 = vadd.f32 %v391_v31, %v313_v39 }
 0x114   :  { %s356_s14 = sshll.u32 %s617_s13, 4  ;;  %v435_v41 = vpop.f32.mrf.mxu0  ;;  %s357_s14 = int_to_ptr.vmem [resolvable:$true] %s356_s14 }
 0x115   :  { %v402_v42 = vpack.c.bf16 %v314_v40, %v314_v40  ;;  %s575_s5 = scalar_lea.vmem %s357_s14, 128  ;;  %p580_p3 = scmp.lt.s32.totalorder %s357_s14, %s357_s14 }
 0x116   :  { %p576_p2 = scmp.ne.s32.totalorder %s357_s14, %s575_s5  ;;  %p581_p4 = scmp.lt.s32.totalorder %s575_s5, %s575_s5 }
 0x117   :  { %326 = vst.msk [vmem:[#allocation13 + $0x4] sm:$0xf] %vm160_vm2, %v402_v42 }
 0x118   :  { %p582_p5 = por %p581_p4, %p580_p3 }
 0x11a   :  { %p583_p6 = pnand %p582_p5, %p576_p2 }
 0x11c   :  { %586 = shalt.err (!%p583_p6)
}
 0x11d   :  { %362 = dma.vmem_to_hbm [thread:$0]  %s357_s14, 128, %s716_s7, [#allocation12], %s611_s0, %s611_s0, %s612_s20  }
 0x11e   :  { %601 = dma.done.wait [#allocation4], 128  }
 0x11f   :  { %602 = vsyncadd [#allocation4], 4294967168 }
 0x120   :  { %603 = dma.done.wait [#allocation12], 256  }
 0x121   :  { %604 = vsyncadd [#allocation12], 4294967040 }
 0x122   :  { %372 = vsyncpa [#allocation3], 1 }
 0x123   :  { %373 = vsyncpa [#allocation6], 1 }
 0x124   :  { %374 = vsyncpa [#allocation9], 1 }
 0x125   :  { %375 = vsyncpa [#allocation4], 1 }
 0x126   :  { %376 = vsyncpa [#allocation12], 1 }

</bundles_post_ra>
